<compile_context>
chip_gen: v7x
topology: tpu7x:2x2x1
jax: 0.10.0
libtpu: 0.0.40
codegen_flags: <defaults>
</compile_context>

<pallas_src>
import jax
import jax.numpy as jnp
import numpy as np
from jax.experimental import pallas as pl
from jax.experimental.pallas import tpu as pltpu

PAD = 128   # lane width; task index lives on the lane axis
ROWS = 8    # sublane count of one f32 vreg tile


def _mtl_kernel(loss_ref, lv_ref, w_ref, out_ref):
    loss = loss_ref[...]            # (1, PAD) f32, 0 on inactive/padding lanes
    lv = lv_ref[...]                # (1, PAD) f32, all task positions
    w = w_ref[...]                  # (1, PAD) f32, 0 on inactive/padding lanes

    uncert = jnp.exp(lv)            # EUP transcendental #1: exp(log_var)
    precision = jnp.exp(-lv)        # EUP transcendental #2: exact exp(-log_var)
    weighted = w * (precision * loss + lv)                 # VPU elementwise
    total = jnp.sum(weighted, axis=-1, keepdims=True)      # (1, 1) XLU lane reduce

    # Assemble the full (ROWS, PAD) tile in registers; single unmasked store.
    row_ids = jax.lax.broadcasted_iota(jnp.int32, (ROWS, PAD), 0)
    tile = jnp.where(
        row_ids == 0, weighted,
        jnp.where(row_ids == 1, uncert,
                  jnp.where(row_ids == 2, total, jnp.float32(0.0))))
    out_ref[...] = tile


def multi_task_loss_pallas(loss_row, log_var_row, weight_row):
    """loss_row/log_var_row/weight_row: f32 (1, PAD). Returns f32 (ROWS, PAD)."""
    return pl.pallas_call(
        _mtl_kernel,
        out_shape=jax.ShapeDtypeStruct((ROWS, PAD), jnp.float32),
        in_specs=[pl.BlockSpec(memory_space=pltpu.MemorySpace.VMEM)] * 3,
        out_specs=pl.BlockSpec(memory_space=pltpu.MemorySpace.VMEM),
    )(loss_row, log_var_row, weight_row)


@jax.jit
def _mtl_forward(idx, log_var_row, weight_row, *loss_scalars):
    """Jitted device path: scatter active losses into a (1, PAD) row, run kernel."""
    loss_row = jnp.zeros((1, PAD), jnp.float32)
    if loss_scalars:  # static (trace-time) check on the number of active tasks
        loss_vals = jnp.stack(
            [jnp.asarray(x, jnp.float32).reshape(()) for x in loss_scalars])
        loss_row = loss_row.at[0, idx].set(loss_vals)
    return multi_task_loss_pallas(loss_row, log_var_row, weight_row)


class MultiTaskLossPallas:
    """JAX/Pallas port of the PyTorch MultiTaskLoss module (forward pass)."""

    def __init__(self, task_names, initial_weights=None):
        assert len(task_names) <= PAD
        self.task_names = list(task_names)
        self.task_index = {t: i for i, t in enumerate(self.task_names)}
        self.initial_weights = initial_weights or {t: 1.0 for t in self.task_names}
        # Zero-init, like nn.Parameter(torch.zeros(1)) per task; stored as one row.
        # TODO(synk): backward/training of log_vars (nn.Parameter semantics) is out of scope here.
        self.log_vars = jnp.zeros((1, PAD), jnp.float32)
        # Cache of (idx, weight_row) device arrays keyed on the active-task tuple.
        self._active_cache = {}

    def _active_arrays(self, active):
        cached = self._active_cache.get(active)
        if cached is None:
            idx_np = np.asarray([self.task_index[t] for t in active], dtype=np.int32)
            w_np = np.zeros((1, PAD), np.float32)
            for t in active:
                w_np[0, self.task_index[t]] = float(self.initial_weights.get(t, 1.0))
            cached = (jnp.asarray(idx_np), jnp.asarray(w_np))
            self._active_cache[active] = cached
        return cached

    def __call__(self, losses, materialize_dict=True):
        # Only tasks present in `losses` contribute (matches PyTorch `if task in losses`).
        active = tuple(t for t in self.task_names if t in losses)
        idx, weight_row = self._active_arrays(active)

        out = _mtl_forward(idx, self.log_vars, weight_row,
                           *[losses[t] for t in active])   # (ROWS, PAD) on device

        total_scalar = out[2, 0]   # device scalar; total broadcast on row 2

        if not materialize_dict:
            # Deferred mode: no blocking sync; caller can materialize the dict later
            # from `out` (row 0 = weighted, row 1 = uncertainty, row 2 = total).
            return total_scalar, out

        # Single device->host transfer for all dict entries (no per-task syncs).
        out_host = np.asarray(jax.device_get(out))
        weighted_h, uncert_h, total_h = out_host[0], out_host[1], out_host[2]

        loss_dict = {}
        for t in active:
            loss_dict[f"{t}_weighted"] = float(weighted_h[self.task_index[t]])
        for t in self.task_names:
            loss_dict[f"{t}_uncertainty"] = float(uncert_h[self.task_index[t]])
        loss_dict["total"] = float(total_h[0])
        return total_scalar, loss_dict


if __name__ == "__main__":
    task_names = ["segmentation", "classification", "depth"]
    initial_weights = {"segmentation": 1.0, "classification": 0.5, "depth": 2.0}
    module = MultiTaskLossPallas(task_names, initial_weights)

    key = jax.random.PRNGKey(0)
    keys = jax.random.split(key, len(task_names))
    # Per-task scalar losses (positive), as would come from upstream criteria.
    losses = {
        t: jnp.abs(jax.random.normal(k, (), dtype=jnp.float32)) + 0.1
        for t, k in zip(task_names, keys)
    }

    total_loss, loss_dict = module(losses)
    total_loss = jax.block_until_ready(total_loss)

    # Plain-JAX reference (same math, no Pallas).
    ref_total = 0.0
    for t in task_names:
        lv = module.log_vars[0, module.task_index[t]]
        w = initial_weights[t]
        ref_w = w * (jnp.exp(-lv) * losses[t] + lv)
        ref_total = ref_total + ref_w
        assert abs(float(ref_w) - loss_dict[f"{t}_weighted"]) < 1e-5
        assert abs(float(jnp.exp(lv)) - loss_dict[f"{t}_uncertainty"]) < 1e-5
    assert abs(float(ref_total) - float(total_loss)) < 1e-5, (float(ref_total), float(total_loss))
    assert abs(float(ref_total) - loss_dict["total"]) < 1e-5

    print("KERNEL_OK")
</pallas_src>

<mosaic_0001>
module attributes {stable_mosaic.version = 11 : i64} {
  func.func @_mtl_kernel(%arg0: memref<1x128xf32, #tpu.memory_space<vmem>>, %arg1: memref<1x128xf32, #tpu.memory_space<vmem>>, %arg2: memref<1x128xf32, #tpu.memory_space<vmem>>, %arg3: memref<8x128xf32, #tpu.memory_space<vmem>>) attributes {dimension_semantics = [], scalar_prefetch = 0 : i64, scratch_operands = 0 : i64, tpu.core_type = #tpu.core_type<tc>} {
    %c0 = arith.constant 0 : index
    %c0_0 = arith.constant 0 : index
    %0 = vector.load %arg0[%c0, %c0_0] : memref<1x128xf32, #tpu.memory_space<vmem>>, vector<1x128xf32>
    %c0_1 = arith.constant 0 : index
    %c0_2 = arith.constant 0 : index
    %1 = vector.load %arg1[%c0_1, %c0_2] : memref<1x128xf32, #tpu.memory_space<vmem>>, vector<1x128xf32>
    %c0_3 = arith.constant 0 : index
    %c0_4 = arith.constant 0 : index
    %2 = vector.load %arg2[%c0_3, %c0_4] : memref<1x128xf32, #tpu.memory_space<vmem>>, vector<1x128xf32>
    %3 = math.exp %1 : vector<1x128xf32>
    %cst = arith.constant 0.000000e+00 : f32
    %4 = vector.broadcast %cst : f32 to vector<1x128xf32>
    %5 = arith.subf %4, %1 : vector<1x128xf32>
    %6 = math.exp %5 : vector<1x128xf32>
    %7 = arith.mulf %6, %0 : vector<1x128xf32>
    %8 = arith.addf %7, %1 : vector<1x128xf32>
    %9 = arith.mulf %2, %8 : vector<1x128xf32>
    %cst_5 = arith.constant dense<0.000000e+00> : vector<1xf32>
    %10 = vector.multi_reduction <add>, %9, %cst_5 [1] : vector<1x128xf32> to vector<1xf32>
    %11 = vector.shape_cast %10 : vector<1xf32> to vector<1x1xf32>
    %12 = tpu.iota {dimensions = array<i32: 0>} : vector<8x128xi32>
    %c0_i32 = arith.constant 0 : i32
    %13 = vector.broadcast %c0_i32 : i32 to vector<8x128xi32>
    %14 = arith.cmpi eq, %12, %13 : vector<8x128xi32>
    %c1_i32 = arith.constant 1 : i32
    %15 = vector.broadcast %c1_i32 : i32 to vector<8x128xi32>
    %16 = arith.cmpi eq, %12, %15 : vector<8x128xi32>
    %c2_i32 = arith.constant 2 : i32
    %17 = vector.broadcast %c2_i32 : i32 to vector<8x128xi32>
    %18 = arith.cmpi eq, %12, %17 : vector<8x128xi32>
    %cst_6 = arith.constant 0.000000e+00 : f32
    %19 = vector.shape_cast %11 : vector<1x1xf32> to vector<1x1xf32>
    %20 = vector.broadcast %19 : vector<1x1xf32> to vector<8x128xf32>
    %21 = vector.broadcast %cst_6 : f32 to vector<8x128xf32>
    %22 = arith.select %18, %20, %21 : vector<8x128xi1>, vector<8x128xf32>
    %23 = vector.shape_cast %3 : vector<1x128xf32> to vector<1x128xf32>
    %24 = vector.broadcast %23 : vector<1x128xf32> to vector<8x128xf32>
    %25 = arith.select %16, %24, %22 : vector<8x128xi1>, vector<8x128xf32>
    %26 = vector.shape_cast %9 : vector<1x128xf32> to vector<1x128xf32>
    %27 = vector.broadcast %26 : vector<1x128xf32> to vector<8x128xf32>
    %28 = arith.select %14, %27, %25 : vector<8x128xi1>, vector<8x128xf32>
    %c0_7 = arith.constant 0 : index
    %c0_8 = arith.constant 0 : index
    %29 = vector.load %arg3[%c0_7, %c0_8] : memref<8x128xf32, #tpu.memory_space<vmem>>, vector<8x128xf32>
    tpu.vector_store %arg3[%c0_7, %c0_8], %28 {strides = array<i32>} : memref<8x128xf32, #tpu.memory_space<vmem>>, vector<8x128xf32>,
    return
  }
}

</mosaic_0001>

<bundles_post_ra>
// kernel: _mtl_forward.1
= control target key start
LH: loop header
LB: loop body
LE: loop exit
PB: predicated region body
PF: predicated region fallthrough
CT: control target
= control target key end

     0   :  { %s140_s0 = inlined_call_operand.vmem [shape: f32[1,128], index: 0, kind: input, shape index: {}]   ;;  %s141_s1 = inlined_call_operand.vmem [shape: f32[1,128], index: 1, kind: input, shape index: {}]   ;;  %s142_s2 = inlined_call_operand.vmem [shape: f32[1,128], index: 2, kind: input, shape index: {}]   ;;  %s143_s3 = inlined_call_operand.hbm [shape: f32[8,128], index: 3, kind: output, shape index: {}]  }
   0x1   :  { %v16_v0 = vld [vmem:[%s141_s1] sm:$0x1] }
   0x2   :  { %v20_v1 = vsub.f32 0.0, %v16_v0 }
   0x3   :  { %8 = vsyncpa [#allocation3], 0  ;;  %v15_v3 = vld [vmem:[%s140_s0] sm:$0x1]  ;;  %vm26_vm0 = vcmask 1040384   ;;  %v30_v11 = vlaneseq  ;;  %s98_s0 = smov [#allocation2]  }
   0x4   :  { %v21_v2 = vmul.f32 1.442695, %v20_v1  ;;  %v17_v6 = vld [vmem:[%s142_s2] sm:$0x1]  ;;  %v18_v10 = vmul.f32 1.442695, %v16_v0 }
   0x5   :  { %v31_v12 = vshrl.u32 %v30_v11, 7  ;;  %s61_s1 = sshll.u32 %s98_s0, 4  ;;  %s62_s1 = int_to_ptr.vmem [resolvable:$true] %s61_s1 }
   0x6   :  { %70 = vpow2.f32 %v21_v2  ;;  %s74_s2 = scalar_lea.vmem %s62_s1, 128  ;;  %p79_p1 = scmp.lt.s32.totalorder %s62_s1, %s62_s1 }
   0x7   :  { %72 = vpow2.f32 %v18_v10  ;;  %v37_v13 = vsub.s32 0, %v31_v12  ;;  %vm34_vm1 = vcmp.eq.s32.totalorder %v31_v12, 2  ;;  %vm33_vm2 = vcmp.eq.s32.totalorder %v31_v12, 1  ;;  %p75_p0 = scmp.ne.s32.totalorder %s62_s1, %s74_s2  ;;  %p80_p2 = scmp.lt.s32.totalorder %s74_s2, %s74_s2 }
   0x8   :  { %vm32_vm3 = vcmp.eq.s32.totalorder %v31_v12, 0 }
   0x9   :  { %p81_p3 = por %p80_p2, %p79_p1 }
   0xb   :  { %p82_p4 = pnand %p81_p3, %p75_p0 }
  0x10   :  { %v71_v4 = vpop.eup %70 }
  0x11   :  { %v23_v5 = vmul.f32 %v71_v4, %v15_v3  ;;  %v73_v14 = vpop.eup %72 }
  0x12   :  { %v44_v16 = vrot.slane %v73_v14, %v37_v13 }
  0x13   :  { %v24_v7 = vadd.f32 %v23_v5, %v16_v0 }
  0x15   :  { %v25_v8 = vmul.f32 %v24_v7, %v17_v6 }
  0x17   :  { %v27_v9 = vsel %vm26_vm0, %v25_v8, 0.0  ;;  %v51_v17 = vrot.slane %v25_v8, %v37_v13 }
  0x18   :  { %28 = vadd.xlane.f32.xlu0 %v27_v9 }
  0xa5   :  { %v29_v15 = vpop.xlane.xlu0 %28 }
  0xa6   :  { %v38_v18 = vrot.slane %v29_v15, %v37_v13 }
  0xa8   :  { %v39_v19 = vsel %vm34_vm1, %v38_v18, 0.0 }
  0xa9   :  { %v46_v20 = vsel %vm33_vm2, %v44_v16, %v39_v19 }
  0xaa   :  { %v53_v21 = vsel %vm32_vm3, %v51_v17, %v46_v20 }
  0xab   :  { %54 = vst [vmem:[#allocation2] sm:$0xff] %v53_v21 }
  0xac   :  { %85 = shalt.err (!%p82_p4)
}
  0xad   :  { %s86_s20 = scalar_lea.hbm %s143_s3, 128 }
  0xae   :  { %p87_p5 = scmp.ne.s32.totalorder %s143_s3, %s86_s20  ;;  %p90_p6 = scmp.lt.u32.totalorder %s86_s20, %s143_s3 }
  0xb0   :  { %p92_p7 = pnand %p90_p6, %p87_p5 }
  0xb2   :  { %95 = shalt.err (!%p92_p7)
}
  0xb3   :  { %64 = dma.vmem_to_hbm [thread:$0]  %s62_s1, 128, %s143_s3, [#allocation3]  }
  0xb4   :  { %96 = dma.done.wait [#allocation3], 128  }
  0xb5   :  { %97 = vsyncadd [#allocation3], 4294967168 }
  0xb6   :  { %68 = vsyncpa [#allocation3], 1 }

</bundles_post_ra>
